<compile_context>
chip_gen: v7x
topology: tpu7x:2x2x1
jax: 0.10.0
libtpu: 0.0.40
codegen_flags: <defaults>
</compile_context>

<pallas_src>
import functools

import jax
import jax.numpy as jnp
from jax.experimental import pallas as pl
from jax.experimental.pallas import tpu as pltpu

LANES = 128
ACC_ROWS = 64                      # (64, 128) f32 accumulator = 8 vregs
MAX_TILE_BYTES = 4 * 1024 * 1024   # 4 MiB per input block per buffer
NUM_CORE_SPLIT = 2                 # leading "parallel" grid axis (v7x megacore)
VMEM_LIMIT_BYTES = 40 * 1024 * 1024


def _round_up(x, m):
    return ((x + m - 1) // m) * m


def _deepsdf_loss_kernel(pred_ref, gt_ref, out_ref, acc_ref, *,
                         delta, rows_valid, tile_rows, inner_blocks,
                         mask_start_block, total_flat_blocks):
    c = pl.program_id(0)               # core-split axis ("parallel")
    i = pl.program_id(1)               # streaming axis  ("arbitrary")
    flat = c * inner_blocks + i        # global block index

    @pl.when(i == 0)
    def _():
        acc_ref[...] = jnp.zeros_like(acc_ref)

    # Stream native dtype, cast in-kernel (free under the DMA roofline).
    p = pred_ref[...].astype(jnp.float32)
    g = gt_ref[...].astype(jnp.float32)
    d = jnp.abs(jnp.clip(p, -delta, delta) - jnp.clip(g, -delta, delta))

    def accumulate(x):
        # Splits the sublane dim exactly on (8,128) vreg tiles -> pure view.
        # 64 lane-parallel partials = 8 independent f32 add chains; keeps the
        # VALU slots busy without a long serial dependence on one vreg.
        acc_ref[...] += x.reshape(tile_rows // ACC_ROWS, ACC_ROWS, LANES).sum(axis=0)

    def accumulate_masked(x):
        # Select-based mask (NOT multiply) — stale block-buffer rows may be NaN.
        row_ids = flat * tile_rows + jax.lax.broadcasted_iota(
            jnp.int32, (tile_rows, 1), 0)
        accumulate(jnp.where(row_ids < rows_valid, x, 0.0))

    if mask_start_block >= total_flat_blocks:
        accumulate(d)                  # no ragged / overflow blocks exist
    elif mask_start_block == 0:
        accumulate_masked(d)           # single (ragged) block
    else:
        @pl.when(flat < mask_start_block)
        def _():
            accumulate(d)              # steady state: no mask cost

        @pl.when(flat >= mask_start_block)
        def _():
            accumulate_masked(d)       # only the last / overflow blocks

    @pl.when(i == inner_blocks - 1)
    def _():
        # Single cross-lane reduce, once per core.
        out_ref[0, 0] = jnp.sum(acc_ref[...])


def _bulk_loss(p2d, g2d, delta, rows):
    itemsize = max(jnp.dtype(p2d.dtype).itemsize, jnp.dtype(g2d.dtype).itemsize)

    # Byte-based tile sizing, kept a multiple of ACC_ROWS (and hence of 32).
    max_rows = MAX_TILE_BYTES // (LANES * itemsize)
    max_tile_rows = max(ACC_ROWS, (max_rows // ACC_ROWS) * ACC_ROWS)
    tile_rows = max_tile_rows if rows >= max_tile_rows else _round_up(rows, ACC_ROWS)

    num_blocks = pl.cdiv(rows, tile_rows)
    num_split = NUM_CORE_SPLIT if num_blocks >= NUM_CORE_SPLIT else 1
    inner_blocks = pl.cdiv(num_blocks, num_split)
    total_flat_blocks = num_split * inner_blocks

    ragged = (rows % tile_rows) != 0
    # Blocks >= mask_start_block may contain rows >= `rows` and must be masked
    # (this also covers the clamped overflow blocks when the split is uneven).
    mask_start_block = (num_blocks - 1) if ragged else num_blocks
    last_block = num_blocks - 1

    if total_flat_blocks > num_blocks:
        # Uneven split: clamp the overflow blocks onto the last valid block
        # (their contribution is fully masked to zero in the kernel).
        def in_index(c, i):
            return (jnp.minimum(c * inner_blocks + i, last_block), 0)
    else:
        def in_index(c, i):
            return (c * inner_blocks + i, 0)

    kernel = functools.partial(
        _deepsdf_loss_kernel,
        delta=float(delta),
        rows_valid=rows,
        tile_rows=tile_rows,
        inner_blocks=inner_blocks,
        mask_start_block=mask_start_block,
        total_flat_blocks=total_flat_blocks,
    )

    partials = pl.pallas_call(
        kernel,
        out_shape=jax.ShapeDtypeStruct((num_split, 1), jnp.float32),
        grid_spec=pltpu.PrefetchScalarGridSpec(
            num_scalar_prefetch=0,
            grid=(num_split, inner_blocks),
            in_specs=[
                pl.BlockSpec((tile_rows, LANES), in_index),
                pl.BlockSpec((tile_rows, LANES), in_index),
            ],
            out_specs=pl.BlockSpec(
                (1, 1), lambda c, i: (c, 0), memory_space=pltpu.SMEM),
            scratch_shapes=[pltpu.VMEM((ACC_ROWS, LANES), jnp.float32)],
        ),
        compiler_params=pltpu.CompilerParams(
            dimension_semantics=("parallel", "arbitrary"),
            vmem_limit_bytes=VMEM_LIMIT_BYTES,
        ),
    )(p2d, g2d)
    return jnp.sum(partials)


def deepsdf_loss(pred, gt, delta=1.0):
    """Pallas implementation of DeepSDFLoss.forward (scalar f32 result)."""
    delta = float(delta)
    p = jnp.reshape(pred, (-1,))
    g = jnp.reshape(gt, (-1,))
    n = p.shape[0]

    # 128-aligned bulk goes through the kernel; the <=127-element tail is a
    # tiny plain-jnp epilogue — no full-array jnp.pad copy of the inputs.
    n_bulk = (n // LANES) * LANES
    rows = n_bulk // LANES

    parts = []
    if rows > 0:
        parts.append(_bulk_loss(p[:n_bulk].reshape(rows, LANES),
                                g[:n_bulk].reshape(rows, LANES), delta, rows))
    if n_bulk < n:
        tp = jnp.clip(p[n_bulk:].astype(jnp.float32), -delta, delta)
        tg = jnp.clip(g[n_bulk:].astype(jnp.float32), -delta, delta)
        parts.append(jnp.sum(jnp.abs(tp - tg)))

    if not parts:
        return jnp.zeros((), jnp.float32)
    total = parts[0]
    for extra in parts[1:]:
        total = total + extra
    return total


def deepsdf_loss_ref(pred, gt, delta=1.0):
    p = jnp.clip(jnp.reshape(pred, (-1, 1)).astype(jnp.float32), -delta, delta)
    g = jnp.clip(jnp.reshape(gt, (-1, 1)).astype(jnp.float32), -delta, delta)
    return jnp.sum(jnp.abs(p - g))


if __name__ == "__main__":
    key = jax.random.PRNGKey(0)
    k1, k2 = jax.random.split(key)
    # Small shapes; scaled so some values exceed |delta|=1 to exercise clamping.
    pred = 2.0 * jax.random.normal(k1, (2, 4, 16, 16), dtype=jnp.float32)
    gt = 2.0 * jax.random.normal(k2, (2, 4, 16, 16), dtype=jnp.float32)

    loss = deepsdf_loss(pred, gt, delta=1.0)
    jax.block_until_ready(loss)
    ref = deepsdf_loss_ref(pred, gt, delta=1.0)
    # NOTE: lane-parallel partial sums reduce in a different order than the
    # serial torch sum; small-rtol agreement is expected (and better-conditioned).
    assert jnp.allclose(loss, ref, rtol=1e-5, atol=1e-5), (loss, ref)

    # Extra sanity check: 128-unaligned size exercises the ragged-row mask
    # and the plain-jnp lane-tail epilogue.
    k3, k4 = jax.random.split(k2)
    pred2 = 2.0 * jax.random.normal(k3, (3, 5, 17, 19), dtype=jnp.float32)
    gt2 = 2.0 * jax.random.normal(k4, (3, 5, 17, 19), dtype=jnp.float32)
    loss2 = deepsdf_loss(pred2, gt2, delta=1.0)
    jax.block_until_ready(loss2)
    ref2 = deepsdf_loss_ref(pred2, gt2, delta=1.0)
    assert jnp.allclose(loss2, ref2, rtol=1e-5, atol=1e-5), (loss2, ref2)

    print("KERNEL_OK")
</pallas_src>

<mosaic_0001>
module attributes {stable_mosaic.version = 11 : i64} {
  func.func @_deepsdf_loss_kernel(%arg0: i32, %arg1: i32, %arg2: memref<64x128xf32, #tpu.memory_space<vmem>>, %arg3: memref<64x128xf32, #tpu.memory_space<vmem>>, %arg4: memref<1x1xf32, #tpu.memory_space<smem>>, %arg5: memref<64x128xf32, #tpu.memory_space<vmem>>) attributes {dimension_semantics = [#tpu.dimension_semantics<parallel>, #tpu.dimension_semantics<arbitrary>], iteration_bounds = array<i64: 1, 1>, scalar_prefetch = 0 : i64, scratch_operands = 1 : i64, tpu.core_type = #tpu.core_type<tc>, window_params = [{transform_indices = @transform_0, window_bounds = array<i64: 64, 128>}, {transform_indices = @transform_1, window_bounds = array<i64: 64, 128>}, {transform_indices = @transform_2, window_bounds = array<i64: 1, 1>}]} {
    %c1_i32 = arith.constant 1 : i32
    %0 = arith.muli %arg0, %c1_i32 : i32
    %1 = arith.addi %0, %arg1 : i32
    %c0_i32 = arith.constant 0 : i32
    %2 = arith.cmpi eq, %arg1, %c0_i32 : i32
    %3 = arith.extui %2 : i1 to i32
    %c0_i32_0 = arith.constant 0 : i32
    %4 = arith.cmpi ne, %3, %c0_i32_0 : i32
    scf.if %4 {
      %cst_15 = arith.constant 0.000000e+00 : f32
      %35 = vector.broadcast %cst_15 : f32 to vector<64x128xf32>
      %c0_16 = arith.constant 0 : index
      %c0_17 = arith.constant 0 : index
      %36 = vector.load %arg5[%c0_16, %c0_17] : memref<64x128xf32, #tpu.memory_space<vmem>>, vector<64x128xf32>
      tpu.vector_store %arg5[%c0_16, %c0_17], %35 {strides = array<i32>} : memref<64x128xf32, #tpu.memory_space<vmem>>, vector<64x128xf32>,
    } else {
    }
    %c0 = arith.constant 0 : index
    %c0_1 = arith.constant 0 : index
    %5 = vector.load %arg2[%c0, %c0_1] : memref<64x128xf32, #tpu.memory_space<vmem>>, vector<64x128xf32>
    %c0_2 = arith.constant 0 : index
    %c0_3 = arith.constant 0 : index
    %6 = vector.load %arg3[%c0_2, %c0_3] : memref<64x128xf32, #tpu.memory_space<vmem>>, vector<64x128xf32>
    %cst = arith.constant -1.000000e+00 : f32
    %cst_4 = arith.constant 1.000000e+00 : f32
    %7 = vector.broadcast %cst : f32 to vector<64x128xf32>
    %8 = arith.maximumf %7, %5 : vector<64x128xf32>
    %9 = vector.broadcast %cst_4 : f32 to vector<64x128xf32>
    %10 = arith.minimumf %9, %8 : vector<64x128xf32>
    %cst_5 = arith.constant -1.000000e+00 : f32
    %cst_6 = arith.constant 1.000000e+00 : f32
    %11 = vector.broadcast %cst_5 : f32 to vector<64x128xf32>
    %12 = arith.maximumf %11, %6 : vector<64x128xf32>
    %13 = vector.broadcast %cst_6 : f32 to vector<64x128xf32>
    %14 = arith.minimumf %13, %12 : vector<64x128xf32>
    %15 = arith.subf %10, %14 : vector<64x128xf32>
    %16 = math.absf %15 : vector<64x128xf32>
    %c64_i32 = arith.constant 64 : i32
    %17 = arith.muli %1, %c64_i32 : i32
    %18 = tpu.iota {dimensions = array<i32: 0>} : vector<64x1xi32>
    %19 = vector.broadcast %17 : i32 to vector<64x1xi32>
    %20 = arith.addi %19, %18 : vector<64x1xi32>
    %c16_i32 = arith.constant 16 : i32
    %21 = vector.broadcast %c16_i32 : i32 to vector<64x1xi32>
    %22 = arith.cmpi slt, %20, %21 : vector<64x1xi32>
    %cst_7 = arith.constant 0.000000e+00 : f32
    %23 = vector.shape_cast %22 : vector<64x1xi1> to vector<64x1xi1>
    %24 = vector.broadcast %23 : vector<64x1xi1> to vector<64x128xi1>
    %25 = vector.broadcast %cst_7 : f32 to vector<64x128xf32>
    %26 = arith.select %24, %16, %25 : vector<64x128xi1>, vector<64x128xf32>
    %c0_8 = arith.constant 0 : index
    %c0_9 = arith.constant 0 : index
    %27 = vector.load %arg5[%c0_8, %c0_9] : memref<64x128xf32, #tpu.memory_space<vmem>>, vector<64x128xf32>
    %28 = vector.shape_cast %26 : vector<64x128xf32> to vector<1x64x128xf32>
    %cst_10 = arith.constant dense<0.000000e+00> : vector<64x128xf32>
    %29 = vector.multi_reduction <add>, %28, %cst_10 [0] : vector<1x64x128xf32> to vector<64x128xf32>
    %30 = arith.addf %27, %29 : vector<64x128xf32>
    %c0_11 = arith.constant 0 : index
    %c0_12 = arith.constant 0 : index
    %31 = vector.load %arg5[%c0_11, %c0_12] : memref<64x128xf32, #tpu.memory_space<vmem>>, vector<64x128xf32>
    tpu.vector_store %arg5[%c0_11, %c0_12], %30 {strides = array<i32>} : memref<64x128xf32, #tpu.memory_space<vmem>>, vector<64x128xf32>,
    %c0_i32_13 = arith.constant 0 : i32
    %32 = arith.cmpi eq, %arg1, %c0_i32_13 : i32
    %33 = arith.extui %32 : i1 to i32
    %c0_i32_14 = arith.constant 0 : i32
    %34 = arith.cmpi ne, %33, %c0_i32_14 : i32
    scf.if %34 {
      %c0_15 = arith.constant 0 : index
      %c0_16 = arith.constant 0 : index
      %35 = vector.load %arg5[%c0_15, %c0_16] : memref<64x128xf32, #tpu.memory_space<vmem>>, vector<64x128xf32>
      %36 = vector.shape_cast %35 : vector<64x128xf32> to vector<1x64x128xf32>
      %cst_17 = arith.constant dense<0.000000e+00> : vector<1xf32>
      %37 = vector.multi_reduction <add>, %36, %cst_17 [1, 2] : vector<1x64x128xf32> to vector<1xf32>
      %38 = vector.shape_cast %37 : vector<1xf32> to vector<1x1x1xf32>
      %39 = vector.extract %38[0, 0, 0] : f32 from vector<1x1x1xf32>
      %c0_18 = arith.constant 0 : index
      %c0_19 = arith.constant 0 : index
      %40 = memref.load %arg4[%c0_18, %c0_19] : memref<1x1xf32, #tpu.memory_space<smem>>
      memref.store %39, %arg4[%c0_18, %c0_19] : memref<1x1xf32, #tpu.memory_space<smem>>
    } else {
    }
    return
  }
  func.func @transform_0(%arg0: i32, %arg1: i32) -> (i32, i32) {
    %c1_i32 = arith.constant 1 : i32
    %0 = arith.muli %arg0, %c1_i32 : i32
    %1 = arith.addi %0, %arg1 : i32
    %c0_i32 = arith.constant 0 : i32
    %c0_i32_0 = arith.constant 0 : i32
    return %1, %c0_i32 : i32, i32
  }
  func.func @transform_1(%arg0: i32, %arg1: i32) -> (i32, i32) {
    %c1_i32 = arith.constant 1 : i32
    %0 = arith.muli %arg0, %c1_i32 : i32
    %1 = arith.addi %0, %arg1 : i32
    %c0_i32 = arith.constant 0 : i32
    %c0_i32_0 = arith.constant 0 : i32
    return %1, %c0_i32 : i32, i32
  }
  func.func @transform_2(%arg0: i32, %arg1: i32) -> (i32, i32) {
    %c0_i32 = arith.constant 0 : i32
    %c0_i32_0 = arith.constant 0 : i32
    return %arg0, %c0_i32 : i32, i32
  }
}

</mosaic_0001>

<bundles_post_ra>
// kernel: tpu_custom_call.1
= control target key start
LH: loop header
LB: loop body
LE: loop exit
PB: predicated region body
PF: predicated region fallthrough
CT: control target
= control target key end

     0   :  { %7 = vsyncpa [#allocation4], 0  ;;  %s407_s0 = inlined_call_operand.hbm [shape: f32[16,128], index: 0, kind: input, shape index: {}]   ;;  %s408_s1 = inlined_call_operand.hbm [shape: f32[16,128], index: 1, kind: input, shape index: {}]   ;;  %s409_s2 = inlined_call_operand.hbm [shape: f32[1,1], index: 2, kind: output, shape index: {}]  }
   0x1   :  { %8 = vsyncpa [#allocation7], 0 }
   0x2   :  { %9 = vsyncpa [#allocation5], 0 }
   0x3   :  { %18 = vsyncadd [#allocation4], 768  ;;  %s351_s9 = smov [#allocation3]   ;;  %s291_s13 = scalar_lea.hbm %s407_s0, 256 }
   0x4   :  { %s23_s10 = sshll.u32 %s351_s9, 4  ;;  %p292_p0 = scmp.ne.s32.totalorder %s407_s0, %s291_s13  ;;  %s24_s10 = int_to_ptr.vmem [resolvable:$true] %s23_s10 }
   0x5   :  { %p295_p1 = scmp.lt.u32.totalorder %s291_s13, %s407_s0 }
   0x7   :  { %p297_p2 = pnand %p295_p1, %p292_p0 }
   0x9   :  { %300 = shalt.err (!%p297_p2)
}
   0xa   :  { %s301_s18 = scalar_lea.vmem %s24_s10, 256  ;;  %s305_s19 = scalar_lea.vmem %s24_s10, 1024 }
   0xb   :  { %p302_p3 = scmp.ne.s32.totalorder %s24_s10, %s301_s18  ;;  %p306_p4 = scmp.lt.s32.totalorder %s24_s10, %s24_s10 }
   0xc   :  { %p307_p5 = scmp.lt.s32.totalorder %s305_s19, %s301_s18 }
   0xe   :  { %p308_p6 = por %p307_p5, %p306_p4 }
  0x10   :  { %p309_p7 = pnand %p308_p6, %p302_p3 }
  0x12   :  { %312 = shalt.err (!%p309_p7)
}
  0x13   :  { %s352_s20 = smov 128   ;;  %s353_s21 = smov 8  }
  0x14   :  { %29 = dma.hbm_to_vmem [thread:$0]  %s407_s0, 256, %s24_s10, [#allocation4], %s352_s20, %s352_s20, %s353_s21  }
  0x15   :  { %38 = vsyncadd [#allocation7], 768  ;;  %s354_s24 = smov [#allocation6]   ;;  %s313_s28 = scalar_lea.hbm %s408_s1, 256 }
  0x16   :  { %s43_s25 = sshll.u32 %s354_s24, 4  ;;  %p314_p8 = scmp.ne.s32.totalorder %s408_s1, %s313_s28  ;;  %s44_s25 = int_to_ptr.vmem [resolvable:$true] %s43_s25 }
  0x17   :  { %p317_p9 = scmp.lt.u32.totalorder %s313_s28, %s408_s1 }
  0x19   :  { %p319_p10 = pnand %p317_p9, %p314_p8 }
  0x1b   :  { %322 = shalt.err (!%p319_p10)
}
  0x1c   :  { %s323_s5 = scalar_lea.vmem %s44_s25, 256  ;;  %s327_s0 = scalar_lea.vmem %s44_s25, 1024 }
  0x1d   :  { %p324_p11 = scmp.ne.s32.totalorder %s44_s25, %s323_s5  ;;  %p328_p12 = scmp.lt.s32.totalorder %s44_s25, %s44_s25 }
  0x1e   :  { %p329_p13 = scmp.lt.s32.totalorder %s327_s0, %s323_s5 }
  0x20   :  { %p330_p0 = por %p329_p13, %p328_p12 }
  0x22   :  { %p331_p1 = pnand %p330_p0, %p324_p11 }
  0x24   :  { %334 = shalt.err (!%p331_p1)
}
  0x25   :  { %49 = dma.hbm_to_vmem [thread:$0]  %s408_s1, 256, %s44_s25, [#allocation7], %s352_s20, %s352_s20, %s353_s21  }
  0x26   :  { %345 = dma.done.wait [#allocation4], 1024  }
  0x27   :  { %346 = vsyncadd [#allocation4], 4294966272 }
  0x28   :  { %347 = dma.done.wait [#allocation7], 1024  }
  0x29   :  { %348 = vsyncadd [#allocation7], 4294966272  ;;  %v77_v0 = vld [vmem:[#allocation3] sm:$0xff]  ;;  %v78_v1 = vld [vmem:[#allocation3 + $0x8] sm:$0xff]  ;;  %s335_s10 = scalar_lea.hbm %s409_s2, 16 }
  0x2a   :  { %v85_v2 = vld [vmem:[#allocation6] sm:$0xff]  ;;  %v86_v3 = vld [vmem:[#allocation6 + $0x8] sm:$0xff]  ;;  %v268_v4 = vclamps-f32 %v77_v0, 1.0  ;;  %v269_v5 = vclamps-f32 %v78_v1, 1.0  ;;  %p336_p2 = scmp.ne.s32.totalorder %s409_s2, %s335_s10  ;;  %p339_p3 = scmp.lt.u32.totalorder %s335_s10, %s409_s2 }
  0x2b   :  { %v276_v6 = vclamps-f32 %v85_v2, 1.0  ;;  %v277_v7 = vclamps-f32 %v86_v3, 1.0 }
  0x2c   :  { %p341_p4 = pnand %p339_p3, %p336_p2 }
  0x2d   :  { %v125_v8 = vsub.f32 %v268_v4, %v276_v6  ;;  %v126_v9 = vsub.f32 %v269_v5, %v277_v7 }
  0x2f   :  { %v133_v10 = vand.u32 2147483647, %v125_v8  ;;  %v134_v11 = vand.u32 2147483647, %v126_v9 }
  0x31   :  { %v235_v12 = vadd.f32 %v134_v11, %v133_v10 }
  0x33   :  { %242 = vadd.xlane.f32.xlu0 %v235_v12 }
  0xc0   :  { %v243_v13 = vpop.xlane.xlu0 %242 }
  0xc1   :  { %v244_v14 = vrot.slane %v243_v13, 4 }
  0xc3   :  { %v245_v15 = vadd.f32 %v244_v14, %v243_v13 }
  0xc5   :  { %v246_v16 = vrot.slane %v245_v15, 2 }
  0xc7   :  { %v247_v17 = vadd.f32 %v246_v16, %v245_v15 }
  0xc9   :  { %v248_v18 = vrot.slane %v247_v17, 1 }
  0xcb   :  { %v249_v19 = vadd.f32 %v248_v18, %v247_v17 }
  0xcd   :  { %284 = vpush %v249_v19 }
  0xfe   :  { %s285_s1 = spop %284 }
  0xff   :  { %252 = sst [smem:[#allocation8]] %s285_s1 }
 0x100   :  { %344 = shalt.err (!%p341_p4)
}
 0x101   :  { %s355_s15 = smov [#allocation8]  }
 0x102   :  { %260 = dma.smem_to_hbm %s355_s15, 16, %s409_s2, [#allocation5]  }
 0x103   :  { %349 = dma.done.wait [#allocation5], 16  }
 0x104   :  { %350 = vsyncadd [#allocation5], 4294967280 }
 0x105   :  { %264 = sfence }
 0x106   :  { %265 = vsyncpa [#allocation4], 1 }
 0x107   :  { %266 = vsyncpa [#allocation7], 1 }
 0x108   :  { %267 = vsyncpa [#allocation5], 1 }

</bundles_post_ra>
